<compile_context>
chip_gen: v7x
topology: tpu7x:2x2x1
jax: 0.10.0
libtpu: 0.0.40
codegen_flags: <defaults>
</compile_context>

<pallas_src>
import functools

import numpy as np
import jax
import jax.numpy as jnp
from jax.experimental import pallas as pl
from jax.experimental.pallas import tpu as pltpu

LEVEL_WEIGHTS = (8.0, 4.0, 2.0, 1.0)  # levels 1..4 (matches default level_weights dict)
TEMPERATURE = 1.0
ALPHA = 0.7


# ----------------------------------------------------------------------------
# Host-side glue: mirrors HierarchicalLoss._build_mappings / prefix2fullidx
# plus the static class->prefix-id table the kernel consumes.
# ----------------------------------------------------------------------------
def build_hierarchy_state(isco_hierarchy):
    level_to_labels = {1: set(), 2: set(), 3: set(), 4: set()}
    all_codes = {c for c in isco_hierarchy if len(c) >= 1}
    for code in all_codes:
        if len(code) >= 4:
            for level in (1, 2, 3, 4):
                level_to_labels[level].add(code[:level])
        else:
            max_level = len(code)
            for level in range(1, max_level + 1):
                level_to_labels[level].add(code[:level])
            for level in range(max_level + 1, 5):
                level_to_labels[level].add(code)
    level_to_labels = {l: sorted(level_to_labels[l]) for l in (1, 2, 3, 4)}
    code_to_idx = {
        l: {c: i for i, c in enumerate(level_to_labels[l])} for l in (1, 2, 3, 4)
    }
    prefix2fullidx = {l: {} for l in (1, 2, 3, 4)}
    for code, idx in code_to_idx[4].items():
        for l in (1, 2, 3, 4):
            prefix2fullidx[l].setdefault(code[:l], []).append(idx)

    # Static per-class prefix-id table: class_prefix_id[l-1, j] = id of labels4[j][:l].
    # Two classes share a level-l prefix iff their ids match -> the kernel can build
    # any level mask with one broadcast integer compare.
    labels4 = level_to_labels[4]
    class_prefix_id = np.full((4, max(1, len(labels4))), -1, dtype=np.int32)
    for j, code in enumerate(labels4):
        for li, level in enumerate((1, 2, 3, 4)):
            class_prefix_id[li, j] = code_to_idx[level][code[:level]]

    return {
        'level_to_labels': level_to_labels,
        'code_to_idx': code_to_idx,
        'prefix2fullidx': prefix2fullidx,
        'class_prefix_id': class_prefix_id,   # numpy [4, ncls]
        '_cpid_cache': {},                    # (C, C_pad) -> device array, uploaded once
    }


# ----------------------------------------------------------------------------
# Pallas kernel: softmax / CE / masked-mass hierarchical loss / argmax
# ----------------------------------------------------------------------------
def _hier_loss_kernel(logits_ref, meta_ref, cpid_ref, out_ref, *,
                      inv_temp, level_weights, num_classes, reuse_argmax):
    x_raw = logits_ref[...]                                       # [TB, Cp] f32
    tb, cp = x_raw.shape
    col = jax.lax.broadcasted_iota(jnp.int32, (tb, cp), 1)
    neg = jnp.float32(-1e30)

    # temperature-scaled logits; padded class columns masked AFTER scaling so the
    # sentinel never interacts with 1/temperature.  Static skip when there is no
    # class padding (C % 128 == 0 path) or temperature == 1.
    xs = x_raw if inv_temp == 1.0 else x_raw * inv_temp
    if num_classes < cp:
        x = jnp.where(col < num_classes, xs, neg)
    else:
        x = xs

    m = jnp.max(x, axis=-1, keepdims=True)                        # [TB, 1]
    e = jnp.exp(x - m)                                            # [TB, Cp]
    z = jnp.sum(e, axis=-1, keepdims=True)                        # [TB, 1]
    inv_z = pl.reciprocal(z, approx=False)                        # exact 1/z, column only
    logz = jnp.log(z) + m                                         # [TB, 1]

    meta = meta_ref[...]                                          # [TB, 16] int32
    tgt = meta[:, 4:5]                                            # target class index
    tgt_logit = jnp.sum(jnp.where(col == tgt, x, 0.0), axis=-1, keepdims=True)
    ce = logz - tgt_logit                                         # [TB, 1] per-sample CE

    cpid = cpid_ref[...]                                          # [4, Cp] int32
    total_w = float(sum(level_weights))
    hl = jnp.zeros_like(ce)
    for l in range(4):                                            # 4 fixed levels, unrolled
        match = cpid[l:l + 1, :] == meta[:, l:l + 1]              # [TB, Cp] bool mask
        em = jnp.sum(jnp.where(match, e, 0.0), axis=-1, keepdims=True)   # [TB, 1]
        # host-precomputed "prefix has member classes < C" flag (meta lanes 5..8)
        has = meta[:, 5 + l:6 + l] > 0                            # [TB, 1] bool
        level_loss = jnp.where(has, -jnp.log(em * inv_z + 1e-8), ce)
        hl = hl + level_weights[l] * level_loss
    hl = hl * (1.0 / total_w)

    # argmax matches torch.argmax(logits, dim=1) (ties -> smallest index).  When
    # temperature == 1 the already-masked x and its max m are reused; otherwise the
    # raw logits are re-masked so scaling cannot alter tie-breaking.
    if reuse_argmax:
        pred = jnp.min(jnp.where(x >= m, col, cp), axis=-1, keepdims=True)
    else:
        xa = jnp.where(col < num_classes, x_raw, neg) if num_classes < cp else x_raw
        ma = jnp.max(xa, axis=-1, keepdims=True)
        pred = jnp.min(jnp.where(xa >= ma, col, cp), axis=-1, keepdims=True)
    pred_f = pred.astype(jnp.float32)                             # exact for C < 2**24

    # lane-dense packed output: lane 0 = ce, lane 1 = hl, lane 2 = pred.
    lane = jax.lax.broadcasted_iota(jnp.int32, out_ref.shape, 1)  # [TB, 128]
    out_ref[...] = jnp.where(lane == 0, ce,
                             jnp.where(lane == 1, hl,
                                       jnp.where(lane == 2, pred_f, 0.0)))


# ----------------------------------------------------------------------------
# Wrapper
# ----------------------------------------------------------------------------
def _query_vmem_limit_bytes():
    phys = 64 * 1024 * 1024           # conservative default (v7x physical VMEM)
    try:
        info = pltpu.get_tpu_info()
        cap = getattr(info, 'vmem_capacity_bytes', None)
        if cap:
            phys = int(cap)
    except Exception:
        pass
    return min(int(phys * 3 // 4), 96 * 1024 * 1024)


def hierarchical_loss_pallas(logits, targets, target_codes, hierarchy_state,
                             level_weights=LEVEL_WEIGHTS, temperature=TEMPERATURE,
                             alpha=ALPHA, compute_level_accuracies=True):
    code_to_idx = hierarchy_state['code_to_idx']
    prefix2fullidx = hierarchy_state['prefix2fullidx']
    level_to_labels = hierarchy_state['level_to_labels']
    class_prefix_id = hierarchy_state['class_prefix_id']

    logits = jnp.asarray(logits)
    if logits.dtype != jnp.float32:
        logits = logits.astype(jnp.float32)
    B, C = logits.shape
    assert C < (1 << 24), "pred is carried as float32; needs C < 2**24"

    if B == 0 or len(target_codes) == 0:
        zero = jnp.float32(0.0)
        return {'total_loss': zero, 'ce_loss': zero, 'hierarchical_loss': zero,
                'level_accuracies': {f'level_{i}_acc': 0.0 for i in (1, 2, 3, 4)}}

    # ---- class padding only when C is not lane-aligned (kernel masks via num_classes)
    if C % 128 == 0:
        C_pad = C
    else:
        C_pad = ((C + 127) // 128) * 128

    # ---- batch tile sizing: ~4 MiB logits block (double-buffered by BlockSpec),
    #      row cap 2048; on v7x make sure there are >= 2 grid steps for megacore.
    row_bytes = C_pad * 4
    tb = max(8, min(2048, (4 * 1024 * 1024 // row_bytes) // 8 * 8))
    B_pad8 = ((B + 7) // 8) * 8
    tb = min(tb, B_pad8)
    while (B_pad8 + tb - 1) // tb < 2 and tb > 8:   # split so both TCs get work
        tb = max(8, (tb // 2 + 7) // 8 * 8)
    B_pad = ((B + tb - 1) // tb) * tb
    n_tiles = B_pad // tb

    # ---- logits: avoid the full-tensor pad copy whenever possible
    if B_pad == B and C_pad == C:
        logits_p = logits
    else:
        logits_p = jnp.pad(logits, ((0, B_pad - B), (0, C_pad - C)))

    # ---- per-sample metadata (int32, host-only O(B) work, no device sync):
    #      lanes 0..3 = level-l prefix id (-2 if absent), lane 4 = target class index,
    #      lanes 5..8 = "prefix has member classes < C" flags.
    if isinstance(targets, (list, tuple, np.ndarray)):
        targets_np = np.asarray(targets, dtype=np.int64)
    else:
        # TODO(synk): passing device targets forces a host sync; prefer numpy targets.
        targets_np = np.asarray(jax.device_get(targets), dtype=np.int64)

    meta = np.zeros((B_pad, 16), dtype=np.int32)
    meta[:, 0:5] = -2
    for i, code in enumerate(target_codes):
        for li, level in enumerate((1, 2, 3, 4)):
            prefix = code[:level]
            meta[i, li] = code_to_idx[level].get(prefix, -2)
            members = prefix2fullidx[level].get(prefix, ())
            meta[i, 5 + li] = 1 if any(0 <= j < C for j in members) else 0
        meta[i, 4] = int(targets_np[i])

    # ---- static class->prefix-id table: built & uploaded once per (hierarchy, C)
    cache_key = (C, C_pad)
    cpid_dev = hierarchy_state['_cpid_cache'].get(cache_key)
    if cpid_dev is None:
        cpid = np.full((4, C_pad), -1, dtype=np.int32)   # -1 never matches a prefix id
        ncls = min(C, class_prefix_id.shape[1])
        cpid[:, :ncls] = class_prefix_id[:, :ncls]
        cpid_dev = jnp.asarray(cpid)
        hierarchy_state['_cpid_cache'][cache_key] = cpid_dev

    kernel = functools.partial(
        _hier_loss_kernel,
        inv_temp=float(1.0 / temperature),
        level_weights=tuple(float(w) for w in level_weights),
        num_classes=C,
        reuse_argmax=(float(temperature) == 1.0),
    )

    cost = pl.CostEstimate(
        flops=int(30 * B_pad * C_pad),
        transcendentals=int(B_pad * C_pad),
        bytes_accessed=int(4 * B_pad * C_pad + 64 * B_pad + 16 * C_pad + 512 * B_pad),
    )

    out = pl.pallas_call(
        kernel,
        out_shape=jax.ShapeDtypeStruct((B_pad, 128), jnp.float32),
        grid=(n_tiles,),
        in_specs=[
            pl.BlockSpec((tb, C_pad), lambda i: (i, 0)),   # logits tile
            pl.BlockSpec((tb, 16), lambda i: (i, 0)),      # per-sample metadata
            pl.BlockSpec((4, C_pad), lambda i: (0, 0)),    # class prefix ids (static)
        ],
        out_specs=pl.BlockSpec((tb, 128), lambda i: (i, 0)),
        compiler_params=pltpu.CompilerParams(
            dimension_semantics=("parallel",),             # shard batch tiles across TCs
            vmem_limit_bytes=_query_vmem_limit_bytes()),
        cost_estimate=cost,
    )(logits_p, jnp.asarray(meta), cpid_dev)

    ce = out[:B, 0]
    hl = out[:B, 1]
    ce_mean = jnp.mean(ce)
    hl_mean = jnp.mean(hl)
    total_loss = alpha * hl_mean + (1.0 - alpha) * ce_mean

    result = {
        'total_loss': total_loss,
        'ce_loss': ce_mean,
        'hierarchical_loss': hl_mean,
        'level_accuracies': None,
        'pred_indices': out[:B, 2].astype(jnp.int32),
    }

    if compute_level_accuracies:
        # TODO(synk): string prefix comparisons have no Pallas equivalent; done
        # host-side (forces one pred sync — disable on the training hot path).
        pred_np = np.asarray(jax.device_get(result['pred_indices']))
        labels4 = level_to_labels[4]
        level_accuracies = {}
        for level in (1, 2, 3, 4):
            correct = 0
            for i in range(B):
                true_code = target_codes[i]
                pi = int(pred_np[i])
                pred_code = labels4[pi] if (len(labels4) > 0 and pi < len(labels4)) else '0000'
                if true_code[:min(level, len(true_code))] == pred_code[:min(level, len(pred_code))]:
                    correct += 1
            level_accuracies[f'level_{level}_acc'] = correct / B if B > 0 else 0.0
        result['level_accuracies'] = level_accuracies

    return result


# ----------------------------------------------------------------------------
# Pure-numpy reference (mirrors the PyTorch forward) for correctness check
# ----------------------------------------------------------------------------
def _reference(logits, targets, target_codes, hierarchy_state,
               level_weights=LEVEL_WEIGHTS, temperature=TEMPERATURE, alpha=ALPHA):
    prefix2fullidx = hierarchy_state['prefix2fullidx']
    logits = np.asarray(logits, np.float64)
    B, C = logits.shape
    x = logits / temperature
    m = x.max(axis=1, keepdims=True)
    e = np.exp(x - m)
    z = e.sum(axis=1, keepdims=True)
    probs = e / z
    logz = np.log(z)[:, 0] + m[:, 0]
    ce = logz - x[np.arange(B), np.asarray(targets)]
    total_w = float(sum(level_weights))
    hls = []
    for i in range(B):
        s = 0.0
        for li, level in enumerate((1, 2, 3, 4)):
            prefix = target_codes[i][:level]
            idxs = [j for j in prefix2fullidx[level].get(prefix, []) if 0 <= j < C]
            if not idxs:
                level_loss = ce[i]
            else:
                level_loss = -np.log(probs[i, idxs].sum() + 1e-08)
            s += level_weights[li] * level_loss
        hls.append(s / total_w)
    hl_mean = float(np.mean(hls))
    ce_mean = float(ce.mean())
    return alpha * hl_mean + (1 - alpha) * ce_mean, ce_mean, hl_mean


if __name__ == "__main__":
    # synthetic ISCO hierarchy: eight 4-digit codes + one short (3-digit) code
    codes = ['1111', '1112', '1120', '1211', '2111', '2112', '2210', '3111', '131']
    isco_hierarchy = {c: {'name': f'occ_{c}'} for c in codes}
    state = build_hierarchy_state(isco_hierarchy)
    code_to_idx = state['code_to_idx']

    B = 8
    C = len(state['level_to_labels'][4])  # 9

    key = jax.random.PRNGKey(0)
    logits = jax.random.normal(key, (B, C), dtype=jnp.float32)

    # mix of deep codes, the short code, and one out-of-hierarchy code
    # ('9999' exercises the no-match -> CE-fallback path)
    target_codes = ['1111', '1112', '1120', '2111', '131', '2210', '9999', '3111']
    targets = np.asarray([code_to_idx[4].get(c, 0) for c in target_codes], np.int32)

    out = hierarchical_loss_pallas(logits, targets, target_codes, state)
    jax.block_until_ready(out['total_loss'])

    ref_total, ref_ce, ref_hl = _reference(np.asarray(jax.device_get(logits)),
                                           targets, target_codes, state)
    assert np.allclose(float(out['total_loss']), ref_total, rtol=1e-4, atol=1e-4)
    assert np.allclose(float(out['ce_loss']), ref_ce, rtol=1e-4, atol=1e-4)
    assert np.allclose(float(out['hierarchical_loss']), ref_hl, rtol=1e-4, atol=1e-4)

    print("KERNEL_OK")
</pallas_src>

<mosaic_0001>
module attributes {stable_mosaic.version = 11 : i64} {
  func.func @_hier_loss_kernel(%arg0: i32, %arg1: memref<8x128xf32, #tpu.memory_space<vmem>>, %arg2: memref<8x16xi32, #tpu.memory_space<vmem>>, %arg3: memref<4x128xi32, #tpu.memory_space<vmem>>, %arg4: memref<8x128xf32, #tpu.memory_space<vmem>>) attributes {dimension_semantics = [#tpu.dimension_semantics<parallel>], iteration_bounds = array<i64: 1>, scalar_prefetch = 0 : i64, scratch_operands = 0 : i64, tpu.core_type = #tpu.core_type<tc>, window_params = [{transform_indices = @transform_0, window_bounds = array<i64: 8, 128>}, {transform_indices = @transform_1, window_bounds = array<i64: 8, 16>}, {pipeline_mode = #tpu.pipeline_mode<synchronous>, transform_indices = @transform_2, window_bounds = array<i64: 4, 128>}, {transform_indices = @transform_3, window_bounds = array<i64: 8, 128>}]} {
    %c0 = arith.constant 0 : index
    %c0_0 = arith.constant 0 : index
    %0 = vector.load %arg1[%c0, %c0_0] : memref<8x128xf32, #tpu.memory_space<vmem>>, vector<8x128xf32>
    %1 = tpu.iota {dimensions = array<i32: 1>} : vector<8x128xi32>
    %c9_i32 = arith.constant 9 : i32
    %2 = vector.broadcast %c9_i32 : i32 to vector<8x128xi32>
    %3 = arith.cmpi slt, %1, %2 : vector<8x128xi32>
    %cst = arith.constant -1.000000e+30 : f32
    %4 = vector.broadcast %cst : f32 to vector<8x128xf32>
    %5 = arith.select %3, %0, %4 : vector<8x128xi1>, vector<8x128xf32>
    %cst_1 = arith.constant dense<0xFF800000> : vector<8xf32>
    %6 = vector.multi_reduction <maximumf>, %5, %cst_1 [1] : vector<8x128xf32> to vector<8xf32>
    %7 = vector.shape_cast %6 : vector<8xf32> to vector<8x1xf32>
    %8 = vector.broadcast %7 : vector<8x1xf32> to vector<8x128xf32>
    %9 = arith.subf %5, %8 : vector<8x128xf32>
    %10 = math.exp %9 : vector<8x128xf32>
    %cst_2 = arith.constant dense<0.000000e+00> : vector<8xf32>
    %11 = vector.multi_reduction <add>, %10, %cst_2 [1] : vector<8x128xf32> to vector<8xf32>
    %12 = vector.shape_cast %11 : vector<8xf32> to vector<8x1xf32>
    %13 = tpu.reciprocal %12 : vector<8x1xf32> -> vector<8x1xf32>
    %14 = math.log %12 : vector<8x1xf32>
    %15 = arith.addf %14, %7 : vector<8x1xf32>
    %c0_3 = arith.constant 0 : index
    %c0_4 = arith.constant 0 : index
    %16 = vector.load %arg2[%c0_3, %c0_4] : memref<8x16xi32, #tpu.memory_space<vmem>>, vector<8x16xi32>
    %17 = vector.extract_strided_slice %16 {offsets = [0, 4], sizes = [8, 1], strides = [1, 1]} : vector<8x16xi32> to vector<8x1xi32>
    %18 = vector.broadcast %17 : vector<8x1xi32> to vector<8x128xi32>
    %19 = arith.cmpi eq, %1, %18 : vector<8x128xi32>
    %cst_5 = arith.constant 0.000000e+00 : f32
    %20 = vector.broadcast %cst_5 : f32 to vector<8x128xf32>
    %21 = arith.select %19, %5, %20 : vector<8x128xi1>, vector<8x128xf32>
    %cst_6 = arith.constant dense<0.000000e+00> : vector<8xf32>
    %22 = vector.multi_reduction <add>, %21, %cst_6 [1] : vector<8x128xf32> to vector<8xf32>
    %23 = vector.shape_cast %22 : vector<8xf32> to vector<8x1xf32>
    %24 = arith.subf %15, %23 : vector<8x1xf32>
    %c0_7 = arith.constant 0 : index
    %c0_8 = arith.constant 0 : index
    %25 = vector.load %arg3[%c0_7, %c0_8] : memref<4x128xi32, #tpu.memory_space<vmem>>, vector<4x128xi32>
    %cst_9 = arith.constant 0.000000e+00 : f32
    %26 = vector.broadcast %cst_9 : f32 to vector<8x1xf32>
    %27 = vector.extract_strided_slice %25 {offsets = [0, 0], sizes = [1, 128], strides = [1, 1]} : vector<4x128xi32> to vector<1x128xi32>
    %28 = vector.extract_strided_slice %16 {offsets = [0, 0], sizes = [8, 1], strides = [1, 1]} : vector<8x16xi32> to vector<8x1xi32>
    %29 = vector.broadcast %27 : vector<1x128xi32> to vector<8x128xi32>
    %30 = vector.broadcast %28 : vector<8x1xi32> to vector<8x128xi32>
    %31 = arith.cmpi eq, %29, %30 : vector<8x128xi32>
    %cst_10 = arith.constant 0.000000e+00 : f32
    %32 = vector.broadcast %cst_10 : f32 to vector<8x128xf32>
    %33 = arith.select %31, %10, %32 : vector<8x128xi1>, vector<8x128xf32>
    %cst_11 = arith.constant dense<0.000000e+00> : vector<8xf32>
    %34 = vector.multi_reduction <add>, %33, %cst_11 [1] : vector<8x128xf32> to vector<8xf32>
    %35 = vector.shape_cast %34 : vector<8xf32> to vector<8x1xf32>
    %36 = vector.extract_strided_slice %16 {offsets = [0, 5], sizes = [8, 1], strides = [1, 1]} : vector<8x16xi32> to vector<8x1xi32>
    %c0_i32 = arith.constant 0 : i32
    %37 = vector.broadcast %c0_i32 : i32 to vector<8x1xi32>
    %38 = arith.cmpi sgt, %36, %37 : vector<8x1xi32>
    %39 = arith.mulf %35, %13 : vector<8x1xf32>
    %cst_12 = arith.constant 9.99999993E-9 : f32
    %40 = vector.broadcast %cst_12 : f32 to vector<8x1xf32>
    %41 = arith.addf %39, %40 : vector<8x1xf32>
    %42 = math.log %41 : vector<8x1xf32>
    %cst_13 = arith.constant 0.000000e+00 : f32
    %43 = vector.broadcast %cst_13 : f32 to vector<8x1xf32>
    %44 = arith.subf %43, %42 : vector<8x1xf32>
    %45 = arith.select %38, %44, %24 : vector<8x1xi1>, vector<8x1xf32>
    %cst_14 = arith.constant 8.000000e+00 : f32
    %46 = vector.broadcast %cst_14 : f32 to vector<8x1xf32>
    %47 = arith.mulf %46, %45 : vector<8x1xf32>
    %48 = arith.addf %26, %47 : vector<8x1xf32>
    %49 = vector.extract_strided_slice %25 {offsets = [1, 0], sizes = [1, 128], strides = [1, 1]} : vector<4x128xi32> to vector<1x128xi32>
    %50 = vector.extract_strided_slice %16 {offsets = [0, 1], sizes = [8, 1], strides = [1, 1]} : vector<8x16xi32> to vector<8x1xi32>
    %51 = vector.broadcast %49 : vector<1x128xi32> to vector<8x128xi32>
    %52 = vector.broadcast %50 : vector<8x1xi32> to vector<8x128xi32>
    %53 = arith.cmpi eq, %51, %52 : vector<8x128xi32>
    %cst_15 = arith.constant 0.000000e+00 : f32
    %54 = vector.broadcast %cst_15 : f32 to vector<8x128xf32>
    %55 = arith.select %53, %10, %54 : vector<8x128xi1>, vector<8x128xf32>
    %cst_16 = arith.constant dense<0.000000e+00> : vector<8xf32>
    %56 = vector.multi_reduction <add>, %55, %cst_16 [1] : vector<8x128xf32> to vector<8xf32>
    %57 = vector.shape_cast %56 : vector<8xf32> to vector<8x1xf32>
    %58 = vector.extract_strided_slice %16 {offsets = [0, 6], sizes = [8, 1], strides = [1, 1]} : vector<8x16xi32> to vector<8x1xi32>
    %c0_i32_17 = arith.constant 0 : i32
    %59 = vector.broadcast %c0_i32_17 : i32 to vector<8x1xi32>
    %60 = arith.cmpi sgt, %58, %59 : vector<8x1xi32>
    %61 = arith.mulf %57, %13 : vector<8x1xf32>
    %cst_18 = arith.constant 9.99999993E-9 : f32
    %62 = vector.broadcast %cst_18 : f32 to vector<8x1xf32>
    %63 = arith.addf %61, %62 : vector<8x1xf32>
    %64 = math.log %63 : vector<8x1xf32>
    %cst_19 = arith.constant 0.000000e+00 : f32
    %65 = vector.broadcast %cst_19 : f32 to vector<8x1xf32>
    %66 = arith.subf %65, %64 : vector<8x1xf32>
    %67 = arith.select %60, %66, %24 : vector<8x1xi1>, vector<8x1xf32>
    %cst_20 = arith.constant 4.000000e+00 : f32
    %68 = vector.broadcast %cst_20 : f32 to vector<8x1xf32>
    %69 = arith.mulf %68, %67 : vector<8x1xf32>
    %70 = arith.addf %48, %69 : vector<8x1xf32>
    %71 = vector.extract_strided_slice %25 {offsets = [2, 0], sizes = [1, 128], strides = [1, 1]} : vector<4x128xi32> to vector<1x128xi32>
    %72 = vector.extract_strided_slice %16 {offsets = [0, 2], sizes = [8, 1], strides = [1, 1]} : vector<8x16xi32> to vector<8x1xi32>
    %73 = vector.broadcast %71 : vector<1x128xi32> to vector<8x128xi32>
    %74 = vector.broadcast %72 : vector<8x1xi32> to vector<8x128xi32>
    %75 = arith.cmpi eq, %73, %74 : vector<8x128xi32>
    %cst_21 = arith.constant 0.000000e+00 : f32
    %76 = vector.broadcast %cst_21 : f32 to vector<8x128xf32>
    %77 = arith.select %75, %10, %76 : vector<8x128xi1>, vector<8x128xf32>
    %cst_22 = arith.constant dense<0.000000e+00> : vector<8xf32>
    %78 = vector.multi_reduction <add>, %77, %cst_22 [1] : vector<8x128xf32> to vector<8xf32>
    %79 = vector.shape_cast %78 : vector<8xf32> to vector<8x1xf32>
    %80 = vector.extract_strided_slice %16 {offsets = [0, 7], sizes = [8, 1], strides = [1, 1]} : vector<8x16xi32> to vector<8x1xi32>
    %c0_i32_23 = arith.constant 0 : i32
    %81 = vector.broadcast %c0_i32_23 : i32 to vector<8x1xi32>
    %82 = arith.cmpi sgt, %80, %81 : vector<8x1xi32>
    %83 = arith.mulf %79, %13 : vector<8x1xf32>
    %cst_24 = arith.constant 9.99999993E-9 : f32
    %84 = vector.broadcast %cst_24 : f32 to vector<8x1xf32>
    %85 = arith.addf %83, %84 : vector<8x1xf32>
    %86 = math.log %85 : vector<8x1xf32>
    %cst_25 = arith.constant 0.000000e+00 : f32
    %87 = vector.broadcast %cst_25 : f32 to vector<8x1xf32>
    %88 = arith.subf %87, %86 : vector<8x1xf32>
    %89 = arith.select %82, %88, %24 : vector<8x1xi1>, vector<8x1xf32>
    %cst_26 = arith.constant 2.000000e+00 : f32
    %90 = vector.broadcast %cst_26 : f32 to vector<8x1xf32>
    %91 = arith.mulf %90, %89 : vector<8x1xf32>
    %92 = arith.addf %70, %91 : vector<8x1xf32>
    %93 = vector.extract_strided_slice %25 {offsets = [3, 0], sizes = [1, 128], strides = [1, 1]} : vector<4x128xi32> to vector<1x128xi32>
    %94 = vector.extract_strided_slice %16 {offsets = [0, 3], sizes = [8, 1], strides = [1, 1]} : vector<8x16xi32> to vector<8x1xi32>
    %95 = vector.broadcast %93 : vector<1x128xi32> to vector<8x128xi32>
    %96 = vector.broadcast %94 : vector<8x1xi32> to vector<8x128xi32>
    %97 = arith.cmpi eq, %95, %96 : vector<8x128xi32>
    %cst_27 = arith.constant 0.000000e+00 : f32
    %98 = vector.broadcast %cst_27 : f32 to vector<8x128xf32>
    %99 = arith.select %97, %10, %98 : vector<8x128xi1>, vector<8x128xf32>
    %cst_28 = arith.constant dense<0.000000e+00> : vector<8xf32>
    %100 = vector.multi_reduction <add>, %99, %cst_28 [1] : vector<8x128xf32> to vector<8xf32>
    %101 = vector.shape_cast %100 : vector<8xf32> to vector<8x1xf32>
    %102 = vector.extract_strided_slice %16 {offsets = [0, 8], sizes = [8, 1], strides = [1, 1]} : vector<8x16xi32> to vector<8x1xi32>
    %c0_i32_29 = arith.constant 0 : i32
    %103 = vector.broadcast %c0_i32_29 : i32 to vector<8x1xi32>
    %104 = arith.cmpi sgt, %102, %103 : vector<8x1xi32>
    %105 = arith.mulf %101, %13 : vector<8x1xf32>
    %cst_30 = arith.constant 9.99999993E-9 : f32
    %106 = vector.broadcast %cst_30 : f32 to vector<8x1xf32>
    %107 = arith.addf %105, %106 : vector<8x1xf32>
    %108 = math.log %107 : vector<8x1xf32>
    %cst_31 = arith.constant 0.000000e+00 : f32
    %109 = vector.broadcast %cst_31 : f32 to vector<8x1xf32>
    %110 = arith.subf %109, %108 : vector<8x1xf32>
    %111 = arith.select %104, %110, %24 : vector<8x1xi1>, vector<8x1xf32>
    %cst_32 = arith.constant 1.000000e+00 : f32
    %112 = vector.broadcast %cst_32 : f32 to vector<8x1xf32>
    %113 = arith.mulf %112, %111 : vector<8x1xf32>
    %114 = arith.addf %92, %113 : vector<8x1xf32>
    %cst_33 = arith.constant 0.0666666701 : f32
    %115 = vector.broadcast %cst_33 : f32 to vector<8x1xf32>
    %116 = arith.mulf %114, %115 : vector<8x1xf32>
    %117 = vector.broadcast %7 : vector<8x1xf32> to vector<8x128xf32>
    %118 = arith.cmpf oge, %5, %117 : vector<8x128xf32>
    %c128_i32 = arith.constant 128 : i32
    %119 = vector.broadcast %c128_i32 : i32 to vector<8x128xi32>
    %120 = arith.select %118, %1, %119 : vector<8x128xi1>, vector<8x128xi32>
    %cst_34 = arith.constant dense<2147483647> : vector<8xi32>
    %121 = vector.multi_reduction <minsi>, %120, %cst_34 [1] : vector<8x128xi32> to vector<8xi32>
    %122 = vector.shape_cast %121 : vector<8xi32> to vector<8x1xi32>
    %123 = arith.sitofp %122 : vector<8x1xi32> to vector<8x1xf32>
    %124 = tpu.iota {dimensions = array<i32: 1>} : vector<8x128xi32>
    %c0_i32_35 = arith.constant 0 : i32
    %125 = vector.broadcast %c0_i32_35 : i32 to vector<8x128xi32>
    %126 = arith.cmpi eq, %124, %125 : vector<8x128xi32>
    %c1_i32 = arith.constant 1 : i32
    %127 = vector.broadcast %c1_i32 : i32 to vector<8x128xi32>
    %128 = arith.cmpi eq, %124, %127 : vector<8x128xi32>
    %c2_i32 = arith.constant 2 : i32
    %129 = vector.broadcast %c2_i32 : i32 to vector<8x128xi32>
    %130 = arith.cmpi eq, %124, %129 : vector<8x128xi32>
    %cst_36 = arith.constant 0.000000e+00 : f32
    %131 = vector.shape_cast %123 : vector<8x1xf32> to vector<8x1xf32>
    %132 = vector.broadcast %131 : vector<8x1xf32> to vector<8x128xf32>
    %133 = vector.broadcast %cst_36 : f32 to vector<8x128xf32>
    %134 = arith.select %130, %132, %133 : vector<8x128xi1>, vector<8x128xf32>
    %135 = vector.shape_cast %116 : vector<8x1xf32> to vector<8x1xf32>
    %136 = vector.broadcast %135 : vector<8x1xf32> to vector<8x128xf32>
    %137 = arith.select %128, %136, %134 : vector<8x128xi1>, vector<8x128xf32>
    %138 = vector.shape_cast %24 : vector<8x1xf32> to vector<8x1xf32>
    %139 = vector.broadcast %138 : vector<8x1xf32> to vector<8x128xf32>
    %140 = arith.select %126, %139, %137 : vector<8x128xi1>, vector<8x128xf32>
    %c0_37 = arith.constant 0 : index
    %c0_38 = arith.constant 0 : index
    %141 = vector.load %arg4[%c0_37, %c0_38] : memref<8x128xf32, #tpu.memory_space<vmem>>, vector<8x128xf32>
    tpu.vector_store %arg4[%c0_37, %c0_38], %140 {strides = array<i32>} : memref<8x128xf32, #tpu.memory_space<vmem>>, vector<8x128xf32>,
    return
  }
  func.func @transform_0(%arg0: i32) -> (i32, i32) {
    %c0_i32 = arith.constant 0 : i32
    %c0_i32_0 = arith.constant 0 : i32
    return %arg0, %c0_i32 : i32, i32
  }
  func.func @transform_1(%arg0: i32) -> (i32, i32) {
    %c0_i32 = arith.constant 0 : i32
    %c0_i32_0 = arith.constant 0 : i32
    return %arg0, %c0_i32 : i32, i32
  }
  func.func @transform_2(%arg0: i32) -> (i32, i32) {
    %c0_i32 = arith.constant 0 : i32
    %c0_i32_0 = arith.constant 0 : i32
    %c0_i32_1 = arith.constant 0 : i32
    return %c0_i32, %c0_i32_0 : i32, i32
  }
  func.func @transform_3(%arg0: i32) -> (i32, i32) {
    %c0_i32 = arith.constant 0 : i32
    %c0_i32_0 = arith.constant 0 : i32
    return %arg0, %c0_i32 : i32, i32
  }
}

</mosaic_0001>

<bundles_post_ra>
// kernel: tpu_custom_call.1
= control target key start
LH: loop header
LB: loop body
LE: loop exit
PB: predicated region body
PF: predicated region fallthrough
CT: control target
= control target key end

     0   :  { %8 = vsyncpa [#allocation3], 0  ;;  %s407_s0 = inlined_call_operand.hbm [shape: f32[8,128], index: 0, kind: input, shape index: {}]   ;;  %s408_s1 = inlined_call_operand.hbm [shape: s32[8,16], index: 1, kind: input, shape index: {}]   ;;  %s409_s2 = inlined_call_operand.vmem [shape: s32[4,128], index: 2, kind: input, shape index: {}]   ;;  %s410_s3 = inlined_call_operand.hbm [shape: f32[8,128], index: 3, kind: output, shape index: {}]  }
   0x1   :  { %9 = vsyncpa [#allocation6], 0 }
   0x2   :  { %10 = vsyncpa [#allocation4], 0  ;;  %s303_s12 = smov [#allocation2]   ;;  %s304_s14 = smov [#allocation5]  }
   0x3   :  { %s17_s13 = sshll.u32 %s303_s12, 4  ;;  %s27_s15 = sshll.u32 %s304_s14, 4  ;;  %s18_s13 = int_to_ptr.vmem [resolvable:$true] %s17_s13  ;;  %s28_s15 = int_to_ptr.vmem [resolvable:$true] %s27_s15 }
   0x4   :  { %s231_s18 = scalar_lea.hbm %s407_s0, 128 }
   0x5   :  { %p232_p0 = scmp.ne.s32.totalorder %s407_s0, %s231_s18  ;;  %p235_p1 = scmp.lt.u32.totalorder %s231_s18, %s407_s0 }
   0x7   :  { %p237_p2 = pnand %p235_p1, %p232_p0 }
   0x9   :  { %240 = shalt.err (!%p237_p2)
}
   0xa   :  { %s241_s23 = scalar_lea.vmem %s18_s13, 128  ;;  %p246_p4 = scmp.lt.s32.totalorder %s18_s13, %s18_s13 }
   0xb   :  { %p242_p3 = scmp.ne.s32.totalorder %s18_s13, %s241_s23  ;;  %p247_p5 = scmp.lt.s32.totalorder %s241_s23, %s241_s23 }
   0xd   :  { %p248_p6 = por %p247_p5, %p246_p4 }
   0xf   :  { %p249_p7 = pnand %p248_p6, %p242_p3 }
  0x11   :  { %252 = shalt.err (!%p249_p7)
}
  0x12   :  { %20 = dma.hbm_to_vmem [thread:$0]  %s407_s0, 128, %s18_s13, [#allocation3]  }
  0x13   :  { %s253_s28 = scalar_lea.hbm %s408_s1, 128 }
  0x14   :  { %p254_p8 = scmp.ne.s32.totalorder %s408_s1, %s253_s28  ;;  %p257_p9 = scmp.lt.u32.totalorder %s253_s28, %s408_s1 }
  0x16   :  { %p259_p10 = pnand %p257_p9, %p254_p8 }
  0x18   :  { %262 = shalt.err (!%p259_p10)
}
  0x19   :  { %s263_s6 = scalar_lea.vmem %s28_s15, 128  ;;  %p268_p12 = scmp.lt.s32.totalorder %s28_s15, %s28_s15 }
  0x1a   :  { %p264_p11 = scmp.ne.s32.totalorder %s28_s15, %s263_s6  ;;  %p269_p13 = scmp.lt.s32.totalorder %s263_s6, %s263_s6 }
  0x1c   :  { %p270_p0 = por %p269_p13, %p268_p12 }
  0x1e   :  { %p271_p1 = pnand %p270_p0, %p264_p11 }
  0x20   :  { %274 = shalt.err (!%p271_p1)
}
  0x21   :  { %30 = dma.hbm_to_vmem [thread:$0]  %s408_s1, 128, %s28_s15, [#allocation6]  }
  0x22   :  { %297 = dma.done.wait [#allocation3], 128  }
  0x23   :  { %298 = vsyncadd [#allocation3], 4294967168 }
  0x24   :  { %299 = dma.done.wait [#allocation6], 128  }
  0x25   :  { %300 = vsyncadd [#allocation6], 4294967168  ;;  %v40_v0 = vlaneseq  ;;  %v305_v1 = vmov 2   ;;  %v306_v2 = vmov 1   ;;  %v39_v4 = vld [vmem:[#allocation2] sm:$0xff]  ;;  %v362_v5 = vld [vmem:[#allocation5] sm:$0xff] }
  0x26   :  { %212 = vset.pattern.permute.xlu1 %v305_v1  ;;  %211 = vset.pattern.permute.xlu0 %v306_v2  ;;  %v307_v7 = vmov 3   ;;  %v308_v8 = vmov 4   ;;  %v309_v9 = vmov 0   ;;  %v64_v16 = vld [vmem:[%s409_s2] sm:$0xf]  ;;  %vm76_vm7 = vcmp.gt.s32.totalorder %v362_v5, 0 }
  0x27   :  { %v359_v3 = vand.u32 127, %v40_v0  ;;  %113 = vperm.xlu1 %212, %v362_v5   ;;  %v66_v12 = vshrl.u32 %v40_v0, 7  ;;  %s311_s2 = smov 125   ;;  %s312_s9 = smov 127  }
  0x28   :  { %s313_s10 = smov 126   ;;  %s314_s11 = smov [#allocation7]  }
  0x29   :  { %vm42_vm0 = vcmp.lt.s32.totalorder %v359_v3, 9  ;;  %v133_v15 = vsub.s32 3, %v66_v12  ;;  %v87_v17 = vsub.s32 1, %v66_v12  ;;  %v110_v20 = vsub.s32 2, %v66_v12  ;;  %s189_s12 = sshll.u32 %s314_s11, 4  ;;  %s190_s12 = int_to_ptr.vmem [resolvable:$true] %s189_s12 }
  0x2a   :  { %v43_v6 = vsel %vm42_vm0, %v39_v4, -1e+30  ;;  %v67_v30 = vsub.s32 0, %v66_v12  ;;  %v310_v4 = vmov 5   ;;  %vm173_vm9 = vcmp.eq.s32.totalorder %v359_v3, 2  ;;  %s275_s13 = scalar_lea.vmem %s190_s12, 128  ;;  %p280_p3 = scmp.lt.s32.totalorder %s190_s12, %s190_s12 }
  0x2b   :  { %44 = vmax.xlane.f32.xlu0 %v43_v6  ;;  %213 = vset.pattern.permute.xlu1 %v307_v7  ;;  %v134_v18 = vrot.slane %v64_v16, %v133_v15  ;;  %v88_v21 = vrot.slane %v64_v16, %v87_v17  ;;  %v111_v24 = vrot.slane %v64_v16, %v110_v20  ;;  %vm172_vm10 = vcmp.eq.s32.totalorder %v359_v3, 1  ;;  %p276_p2 = scmp.ne.s32.totalorder %s190_s12, %s275_s13  ;;  %p281_p4 = scmp.lt.s32.totalorder %s275_s13, %s275_s13 }
  0x2c   :  { %136 = vperm.xlu1 %213, %v362_v5   ;;  %v68_v33 = vrot.slane %v64_v16, %v67_v30  ;;  %vm171_vm11 = vcmp.eq.s32.totalorder %v359_v3, 0 }
  0x2d   :  { %p282_p5 = por %p281_p4, %p280_p3 }
  0x2f   :  { %p283_p6 = pnand %p282_p5, %p276_p2 }
  0x30   :  { %214 = vset.pattern.permute.xlu1 %v308_v8 }
  0x31   :  { %57 = vperm.xlu1 %214, %v362_v5  }
  0x41   :  { %90 = vperm.xlu0 %211, %v362_v5  }
  0x45   :  { %215 = vset.pattern.permute.xlu0 %v309_v9 }
  0x46   :  { %70 = vperm.xlu0 %215, %v362_v5  }
  0x4a   :  { %216 = vset.pattern.permute.xlu0 %v310_v4 }
  0xa6   :  { %v114_v14 = vpop.permute.xlu1 %113 }
  0xa7   :  { %vm115_vm4 = vcmp.eq.s32.totalorder %v111_v24, %v114_v14 }
  0xab   :  { %v137_v19 = vpop.permute.xlu1 %136 }
  0xac   :  { %vm138_vm1 = vcmp.eq.s32.totalorder %v134_v18, %v137_v19 }
  0xb0   :  { %v58_v27 = vpop.permute.xlu1 %57 }
  0xb1   :  { %vm59_vm5 = vcmp.eq.s32.totalorder %v359_v3, %v58_v27 }
  0xb2   :  { %v60_v31 = vsel %vm59_vm5, %v43_v6, 0.0 }
  0xb8   :  { %v369_v10 = vpop.xlane.xlu0 %44 }
  0xb9   :  { %v46_v11 = vsub.f32 %v43_v6, %v369_v10  ;;  %vm154_vm3 = vcmp.ge.f32.partialorder %v43_v6, %v369_v10 }
  0xba   :  { %v378_v29 = vsel %vm154_vm3, %v359_v3, 128 }
  0xbb   :  { %v47_v13 = vmul.f32 1.442695, %v46_v11  ;;  %v157_v32 = vshra.s32 %v378_v29, 16  ;;  %v156_v14 = vand.u32 65535, %v378_v29 }
  0xbd   :  { %217 = vpow2.f32 %v47_v13  ;;  %v159_v35 = vcvt.s32.f32 %v157_v32  ;;  %v158_v15 = vcvt.s32.f32 %v156_v14 }
  0xc0   :  { %v91_v23 = vpop.permute.xlu0 %90 }
  0xc1   :  { %vm92_vm2 = vcmp.eq.s32.totalorder %v88_v21, %v91_v23 }
  0xc5   :  { %v71_v34 = vpop.permute.xlu0 %70 }
  0xc6   :  { %vm72_vm6 = vcmp.eq.s32.totalorder %v68_v33, %v71_v34 }
  0xc7   :  { %v218_v22 = vpop.eup %217 }
  0xc8   :  { %49 = vadd.xlane.f32.xlu1 %v218_v22  ;;  %v139_v25 = vsel %vm138_vm1, %v218_v22, 0.0  ;;  %v93_v26 = vsel %vm92_vm2, %v218_v22, 0.0  ;;  %v116_v28 = vsel %vm115_vm4, %v218_v22, 0.0  ;;  %v73_v36 = vsel %vm72_vm6, %v218_v22, 0.0 }
  0xc9   :  { %140 = vadd.xlane.f32.xlu0 %v139_v25 }
  0xcc   :  { %94 = vadd.xlane.f32.xlu1 %v93_v26 }
  0xd0   :  { %117 = vadd.xlane.f32.xlu1 %v116_v28 }
  0xd4   :  { %61 = vadd.xlane.f32.xlu1 %v60_v31 }
  0xd8   :  { %160 = vmin.xlane.f32.xlu1 %v159_v35 }
  0xdc   :  { %74 = vadd.xlane.f32.xlu1 %v73_v36 }
 0x155   :  { %v50_v37 = vpop.xlane.xlu1 %49 }
 0x156   :  { %219 = vrcp.f32 %v50_v37  ;;  %v141_v41 = vpop.xlane.xlu0 %140 }
 0x157   :  { %221 = vlog2.f32 %v50_v37 }
 0x159   :  { %v95_v38 = vpop.xlane.xlu1 %94 }
 0x15d   :  { %v118_v39 = vpop.xlane.xlu1 %117 }
 0x160   :  { %v220_v40 = vpop.eup %219 }
 0x161   :  { %v142_v42 = vmul.f32 %v220_v40, %v141_v41  ;;  %v96_v43 = vmul.f32 %v220_v40, %v95_v38  ;;  %v119_v44 = vmul.f32 %v220_v40, %v118_v39  ;;  %v62_v45 = vpop.xlane.xlu1 %61  ;;  %v222_v50 = vpop.eup %221 }
 0x162   :  { %v53_v52 = vmul.f32 0.6931472, %v222_v50 }
 0x163   :  { %v143_v46 = vadd.f32 1e-08, %v142_v42  ;;  %v97_v47 = vadd.f32 1e-08, %v96_v43  ;;  %v120_v48 = vadd.f32 1e-08, %v119_v44 }
 0x164   :  { %v54_v55 = vadd.f32 %v53_v52, %v369_v10 }
 0x165   :  { %223 = vlog2.f32 %v143_v46  ;;  %v161_v49 = vpop.xlane.xlu1 %160 }
 0x166   :  { %225 = vlog2.f32 %v97_v47  ;;  %v63_v63 = vsub.f32 %v54_v55, %v62_v45  ;;  %vm162_vm8 = vcmp.eq.f32.partialorder %v159_v35, %v161_v49  ;;  %v167_v26 = vcvt.f32.s32 %v161_v49 }
 0x167   :  { %227 = vlog2.f32 %v120_v48  ;;  %v163_v16 = vsel %vm162_vm8, %v158_v15, inf }
 0x168   :  { %v168_v5 = vshll.u32 %v167_v26, 16 }
 0x169   :  { %v75_v51 = vpop.xlane.xlu1 %74 }
 0x16a   :  { %v77_v53 = vmul.f32 %v220_v40, %v75_v51 }
 0x16c   :  { %v78_v54 = vadd.f32 1e-08, %v77_v53 }
 0x16e   :  { %229 = vlog2.f32 %v78_v54 }
 0x16f   :  { %v224_v56 = vpop.eup %223 }
 0x170   :  { %v226_v57 = vpop.eup %225  ;;  %v145_v58 = vmul.f32 0.6931472, %v224_v56 }
 0x171   :  { %v228_v59 = vpop.eup %227  ;;  %v99_v60 = vmul.f32 0.6931472, %v226_v57 }
 0x172   :  { %v146_v61 = vsub.f32 0.0, %v145_v58  ;;  %v122_v62 = vmul.f32 0.6931472, %v228_v59 }
 0x173   :  { %v100_v0 = vsub.f32 0.0, %v99_v60 }
 0x174   :  { %v123_v1 = vsub.f32 0.0, %v122_v62  ;;  %v147_v2 = vsel %vm76_vm7, %v146_v61, %v63_v63 }
 0x175   :  { %149 = vrot.lane.b32.xlu0 %v147_v2, %s311_s2  ;;  %v101_v6 = vsel %vm76_vm7, %v100_v0, %v63_v63 }
 0x176   :  { %v102_v7 = vmul.f32 4.0, %v101_v6  ;;  %v124_v8 = vsel %vm76_vm7, %v123_v1, %v63_v63 }
 0x177   :  { %v125_v11 = vmul.f32 2.0, %v124_v8 }
 0x178   :  { %v230_v9 = vpop.eup %229  ;;  %104 = vrot.lane.b32.xlu1 %v102_v7, %s312_s9 }
 0x179   :  { %v80_v10 = vmul.f32 0.6931472, %v230_v9 }
 0x17b   :  { %v81_v12 = vsub.f32 0.0, %v80_v10 }
 0x17c   :  { %127 = vrot.lane.b32.xlu1 %v125_v11, %s313_s10 }
 0x17d   :  { %v82_v13 = vsel %vm76_vm7, %v81_v12, %v63_v63 }
 0x17e   :  { %v83_v18 = vmul.f32 8.0, %v82_v13 }
 0x1a0   :  { %164 = vmin.xlane.f32.xlu1 %v163_v16 }
 0x1e7   :  { %v150_v22 = vpop.permute.xlu0 %149 }
 0x1ea   :  { %v105_v17 = vpop.permute.xlu1 %104 }
 0x1eb   :  { %v107_v19 = vadd.f32 %v105_v17, %v83_v18 }
 0x1ee   :  { %v128_v20 = vpop.permute.xlu1 %127 }
 0x1ef   :  { %v130_v21 = vadd.f32 %v128_v20, %v107_v19 }
 0x1f1   :  { %v152_v23 = vadd.f32 %v150_v22, %v130_v21 }
 0x1f3   :  { %v153_v24 = vmul.f32 0.06666667, %v152_v23 }
 0x1f5   :  { %177 = vperm.xlu0 %216, %v153_v24  }
 0x22d   :  { %v165_v25 = vpop.xlane.xlu1 %164 }
 0x22e   :  { %v166_v27 = vcvt.f32.s32 %v165_v25 }
 0x230   :  { %v169_v28 = vadd.s32 %v168_v5, %v166_v27 }
 0x232   :  { %v170_v30 = vcvt.s32.f32 %v169_v28 }
 0x234   :  { %v174_v31 = vsel %vm173_vm9, %v170_v30, 0.0 }
 0x274   :  { %v178_v29 = vpop.permute.xlu0 %177 }
 0x275   :  { %v180_v32 = vsel %vm172_vm10, %v178_v29, %v174_v31 }
 0x276   :  { %v181_v33 = vsel %vm171_vm11, %v63_v63, %v180_v32 }
 0x277   :  { %182 = vst [vmem:[#allocation7] sm:$0xff] %v181_v33 }
 0x278   :  { %286 = shalt.err (!%p283_p6)
}
 0x279   :  { %s287_s16 = scalar_lea.hbm %s410_s3, 128 }
 0x27a   :  { %p288_p7 = scmp.ne.s32.totalorder %s410_s3, %s287_s16  ;;  %p291_p8 = scmp.lt.u32.totalorder %s287_s16, %s410_s3 }
 0x27c   :  { %p293_p9 = pnand %p291_p8, %p288_p7 }
 0x27e   :  { %296 = shalt.err (!%p293_p9)
}
 0x27f   :  { %192 = dma.vmem_to_hbm [thread:$0]  %s190_s12, 128, %s410_s3, [#allocation4]  }
 0x280   :  { %301 = dma.done.wait [#allocation4], 128  }
 0x281   :  { %302 = vsyncadd [#allocation4], 4294967168 }
 0x282   :  { %196 = vsyncpa [#allocation3], 1 }
 0x283   :  { %197 = vsyncpa [#allocation6], 1 }
 0x284   :  { %198 = vsyncpa [#allocation4], 1 }

</bundles_post_ra>
